<compile_context>
chip_gen: v7x
topology: tpu7x:2x2x1
jax: 0.10.0
libtpu: 0.0.40
codegen_flags: <defaults>
</compile_context>

<pallas_src>
import functools

import jax
import jax.numpy as jnp
import numpy as np
from jax.experimental import pallas as pl
from jax.experimental.pallas import tpu as pltpu

IN_F, HID_F, OUT_F = 42, 84, 3
HID_PAD = 128    # lane-padded hidden width (keeps the intermediate lane-dense)
OUT_PAD = 8      # lane width of the kernel output (sliced to 3 in the wrapper)
SUBLANES = 8     # minimum sublane tile
MAX_TM = 512     # cap on rows per grid step


def _mlp_kernel(x_ref, w1_ref, b1_ref, w2_ref, b2_ref, o_ref):
    # x_ref : (tm, 42)       raw flattened boards (tail block may be garbage rows)
    # w1_ref: (42, 128)      fc1.W^T, cols 84:128 zero
    # b1_ref: (1, 128)       fc1.b,   cols 84:128 zero
    # w2_ref: (128, 8)       fc2.W^T, rows 84:128 and cols 3:8 zero
    # b2_ref: (1, 8)         fc2.b,   cols 3:8 zero
    h = jnp.dot(x_ref[...], w1_ref[...], preferred_element_type=jnp.float32)
    h = jnp.maximum(h + b1_ref[...], 0.0)                      # ReLU
    o_ref[...] = (jnp.dot(h, w2_ref[...], preferred_element_type=jnp.float32)
                  + b2_ref[...]).astype(o_ref.dtype)


def init_classifier_params(w1, b1, w2, b2):
    """One-time prep: transpose + zero-pad the weights/biases (hoisted out of
    the per-call path)."""
    w1p = jnp.zeros((IN_F, HID_PAD), jnp.float32)
    w1p = w1p.at[:, :HID_F].set(w1.T.astype(jnp.float32))
    b1p = jnp.zeros((1, HID_PAD), jnp.float32)
    b1p = b1p.at[0, :HID_F].set(b1.astype(jnp.float32))
    w2p = jnp.zeros((HID_PAD, OUT_PAD), jnp.float32)
    w2p = w2p.at[:HID_F, :OUT_F].set(w2.T.astype(jnp.float32))
    b2p = jnp.zeros((1, OUT_PAD), jnp.float32)
    b2p = b2p.at[0, :OUT_F].set(b2.astype(jnp.float32))
    return tuple(jax.device_put(p) for p in (w1p, b1p, w2p, b2p))


def _pick_tm(n):
    """Rows per grid step: aim for >=2 grid steps (v7x has 2 TensorCores on the
    'parallel' axis), cap at MAX_TM, round to a sublane multiple."""
    half = -(-n // 2)                               # ceil(n / 2)
    tm = ((half + SUBLANES - 1) // SUBLANES) * SUBLANES
    return max(SUBLANES, min(MAX_TM, tm))


@functools.partial(jax.jit, static_argnames=("tm",))
def classifier_forward_batched(xb, params, *, tm=None):
    """Throughput path: N independent boards per pallas_call, grid over rows."""
    n = xb.shape[0]
    x = xb.reshape(n, -1).astype(jnp.float32)
    assert x.shape[1] == IN_F, "each board must have 42 elements"
    if tm is None:
        tm = _pick_tm(n)
    w1p, b1p, w2p, b2p = params
    out = pl.pallas_call(
        _mlp_kernel,
        out_shape=jax.ShapeDtypeStruct((n, OUT_PAD), jnp.float32),
        grid_spec=pltpu.PrefetchScalarGridSpec(
            num_scalar_prefetch=0,
            grid=(pl.cdiv(n, tm),),                 # tail block masked by Pallas
            in_specs=[
                pl.BlockSpec((tm, IN_F), lambda i: (i, 0)),
                pl.BlockSpec((IN_F, HID_PAD), lambda i: (0, 0)),
                pl.BlockSpec((1, HID_PAD), lambda i: (0, 0)),
                pl.BlockSpec((HID_PAD, OUT_PAD), lambda i: (0, 0)),
                pl.BlockSpec((1, OUT_PAD), lambda i: (0, 0)),
            ],
            out_specs=pl.BlockSpec((tm, OUT_PAD), lambda i: (i, 0)),
        ),
        compiler_params=pltpu.CompilerParams(
            dimension_semantics=("parallel",)),
    )(x, w1p, b1p, w2p, b2p)
    return out[:, :OUT_F]


@jax.jit
def classifier_forward(x, params):
    """Exact module semantics: flatten whole input (42 elems) -> (3,) logits."""
    x_flat = x.reshape(-1).astype(jnp.float32)
    assert x_flat.shape[0] == IN_F, "Classifier expects exactly 42 input elements"
    return classifier_forward_batched(x_flat.reshape(1, IN_F), params)[0]


def reference_forward(x_flat, w1, b1, w2, b2):
    h = jnp.maximum(x_flat.astype(jnp.float32) @ w1.T + b1, 0.0)
    return h @ w2.T + b2


if __name__ == "__main__":
    key = jax.random.PRNGKey(0)
    k_x, k_xb, k_w1, k_b1, k_w2, k_b2 = jax.random.split(key, 6)

    # PyTorch Linear shapes: weight (out, in), bias (out,)
    bound1 = 1.0 / np.sqrt(IN_F)
    w1 = jax.random.uniform(k_w1, (HID_F, IN_F), minval=-bound1, maxval=bound1,
                            dtype=jnp.float32)
    b1 = jax.random.uniform(k_b1, (HID_F,), minval=-bound1, maxval=bound1,
                            dtype=jnp.float32)
    bound2 = 1.0 / np.sqrt(HID_F)
    w2 = jax.random.uniform(k_w2, (OUT_F, HID_F), minval=-bound2, maxval=bound2,
                            dtype=jnp.float32)
    b2 = jax.random.uniform(k_b2, (OUT_F,), minval=-bound2, maxval=bound2,
                            dtype=jnp.float32)

    # One-time parameter prep (hoisted out of the per-call path).
    params = init_classifier_params(w1, b1, w2, b2)

    # --- single 6x7 Connect-4 board (matches the module's forward exactly) ---
    x = jax.random.normal(k_x, (6, 7), dtype=jnp.float32)
    out1 = jax.block_until_ready(classifier_forward(x, params))
    ref1 = reference_forward(x.reshape(-1), w1, b1, w2, b2)
    np.testing.assert_allclose(np.asarray(out1), np.asarray(ref1),
                               rtol=1e-5, atol=1e-5)

    # --- batched path: 260 boards (non-multiple of tile -> exercises the
    # masked tail block), 2 parallel grid steps ------------------------------
    xb = jax.random.normal(k_xb, (260, 6, 7), dtype=jnp.float32)
    outb = jax.block_until_ready(classifier_forward_batched(xb, params))
    refb = jax.vmap(lambda b: reference_forward(b.reshape(-1), w1, b1, w2, b2))(xb)
    np.testing.assert_allclose(np.asarray(outb), np.asarray(refb),
                               rtol=1e-5, atol=1e-5)

    print("KERNEL_OK")
</pallas_src>

<mosaic_0001>
module attributes {stable_mosaic.version = 11 : i64} {
  func.func @_mlp_kernel(%arg0: i32, %arg1: memref<8x42xf32, #tpu.memory_space<vmem>>, %arg2: memref<42x128xf32, #tpu.memory_space<vmem>>, %arg3: memref<1x128xf32, #tpu.memory_space<vmem>>, %arg4: memref<128x8xf32, #tpu.memory_space<vmem>>, %arg5: memref<1x8xf32, #tpu.memory_space<vmem>>, %arg6: memref<8x8xf32, #tpu.memory_space<vmem>>) attributes {dimension_semantics = [#tpu.dimension_semantics<parallel>], iteration_bounds = array<i64: 1>, scalar_prefetch = 0 : i64, scratch_operands = 0 : i64, tpu.core_type = #tpu.core_type<tc>, window_params = [{transform_indices = @transform_0, window_bounds = array<i64: 8, 42>}, {pipeline_mode = #tpu.pipeline_mode<synchronous>, transform_indices = @transform_1, window_bounds = array<i64: 42, 128>}, {pipeline_mode = #tpu.pipeline_mode<synchronous>, transform_indices = @transform_2, window_bounds = array<i64: 1, 128>}, {pipeline_mode = #tpu.pipeline_mode<synchronous>, transform_indices = @transform_3, window_bounds = array<i64: 128, 8>}, {pipeline_mode = #tpu.pipeline_mode<synchronous>, transform_indices = @transform_4, window_bounds = array<i64: 1, 8>}, {transform_indices = @transform_5, window_bounds = array<i64: 8, 8>}]} {
    %c0 = arith.constant 0 : index
    %c0_0 = arith.constant 0 : index
    %0 = vector.load %arg1[%c0, %c0_0] : memref<8x42xf32, #tpu.memory_space<vmem>>, vector<8x42xf32>
    %c0_1 = arith.constant 0 : index
    %c0_2 = arith.constant 0 : index
    %1 = vector.load %arg2[%c0_1, %c0_2] : memref<42x128xf32, #tpu.memory_space<vmem>>, vector<42x128xf32>
    %cst = arith.constant dense<0.000000e+00> : vector<8x128xf32>
    %2 = tpu.matmul %0, %1, %cst {dimension_numbers = #tpu.dot_dimension_numbers<[1], [0], [0], [1], [0, 0, 1, 1], [], []>} : vector<8x42xf32>, vector<42x128xf32>, vector<8x128xf32> -> vector<8x128xf32>
    %c0_3 = arith.constant 0 : index
    %c0_4 = arith.constant 0 : index
    %3 = vector.load %arg3[%c0_3, %c0_4] : memref<1x128xf32, #tpu.memory_space<vmem>>, vector<1x128xf32>
    %4 = vector.broadcast %3 : vector<1x128xf32> to vector<8x128xf32>
    %5 = arith.addf %2, %4 : vector<8x128xf32>
    %cst_5 = arith.constant 0.000000e+00 : f32
    %6 = vector.broadcast %cst_5 : f32 to vector<8x128xf32>
    %7 = arith.maximumf %5, %6 : vector<8x128xf32>
    %c0_6 = arith.constant 0 : index
    %c0_7 = arith.constant 0 : index
    %8 = vector.load %arg4[%c0_6, %c0_7] : memref<128x8xf32, #tpu.memory_space<vmem>>, vector<128x8xf32>
    %cst_8 = arith.constant dense<0.000000e+00> : vector<8x8xf32>
    %9 = tpu.matmul %7, %8, %cst_8 {dimension_numbers = #tpu.dot_dimension_numbers<[1], [0], [0], [1], [0, 0, 1, 1], [], []>} : vector<8x128xf32>, vector<128x8xf32>, vector<8x8xf32> -> vector<8x8xf32>
    %c0_9 = arith.constant 0 : index
    %c0_10 = arith.constant 0 : index
    %10 = vector.load %arg5[%c0_9, %c0_10] : memref<1x8xf32, #tpu.memory_space<vmem>>, vector<1x8xf32>
    %11 = vector.broadcast %10 : vector<1x8xf32> to vector<8x8xf32>
    %12 = arith.addf %9, %11 : vector<8x8xf32>
    %c0_11 = arith.constant 0 : index
    %c0_12 = arith.constant 0 : index
    %13 = vector.load %arg6[%c0_11, %c0_12] : memref<8x8xf32, #tpu.memory_space<vmem>>, vector<8x8xf32>
    tpu.vector_store %arg6[%c0_11, %c0_12], %12 {strides = array<i32>} : memref<8x8xf32, #tpu.memory_space<vmem>>, vector<8x8xf32>,
    return
  }
  func.func @transform_0(%arg0: i32) -> (i32, i32) {
    %c0_i32 = arith.constant 0 : i32
    %c0_i32_0 = arith.constant 0 : i32
    return %arg0, %c0_i32 : i32, i32
  }
  func.func @transform_1(%arg0: i32) -> (i32, i32) {
    %c0_i32 = arith.constant 0 : i32
    %c0_i32_0 = arith.constant 0 : i32
    %c0_i32_1 = arith.constant 0 : i32
    return %c0_i32, %c0_i32_0 : i32, i32
  }
  func.func @transform_2(%arg0: i32) -> (i32, i32) {
    %c0_i32 = arith.constant 0 : i32
    %c0_i32_0 = arith.constant 0 : i32
    %c0_i32_1 = arith.constant 0 : i32
    return %c0_i32, %c0_i32_0 : i32, i32
  }
  func.func @transform_3(%arg0: i32) -> (i32, i32) {
    %c0_i32 = arith.constant 0 : i32
    %c0_i32_0 = arith.constant 0 : i32
    %c0_i32_1 = arith.constant 0 : i32
    return %c0_i32, %c0_i32_0 : i32, i32
  }
  func.func @transform_4(%arg0: i32) -> (i32, i32) {
    %c0_i32 = arith.constant 0 : i32
    %c0_i32_0 = arith.constant 0 : i32
    %c0_i32_1 = arith.constant 0 : i32
    return %c0_i32, %c0_i32_0 : i32, i32
  }
  func.func @transform_5(%arg0: i32) -> (i32, i32) {
    %c0_i32 = arith.constant 0 : i32
    %c0_i32_0 = arith.constant 0 : i32
    return %arg0, %c0_i32 : i32, i32
  }
}

</mosaic_0001>

<bundles_post_ra>
// kernel: classifier_forward_batched.1
= control target key start
LH: loop header
LB: loop body
LE: loop exit
PB: predicated region body
PF: predicated region fallthrough
CT: control target
= control target key end

     0   :  { %10 = vsyncpa [#allocation3], 0  ;;  %v368_v2 = vmov 0.0|0.0   ;;  %vm369_vm0 = vmmov 0   ;;  %v370_v6 = vmov 0.0   ;;  %vm39_vm1 = vcmask 1041408   ;;  %s492_s0 = inlined_call_operand.vmem [shape: f32[1,42], index: 0, kind: input, shape index: {}]   ;;  %s493_s1 = inlined_call_operand.vmem [shape: f32[42,128], index: 1, kind: input, shape index: {}]   ;;  %s494_s2 = inlined_call_operand.vmem [shape: f32[1,128], index: 2, kind: input, shape index: {}]   ;;  %s495_s3 = inlined_call_operand.vmem [shape: f32[128,8], index: 3, kind: input, shape index: {}]   ;;  %s496_s4 = inlined_call_operand.vmem [shape: f32[1,8], index: 4, kind: input, shape index: {}]   ;;  %s497_s5 = inlined_call_operand.hbm [shape: f32[1,8], index: 5, kind: output, shape index: {}]  }
   0x1   :  { %v22_v0 = vld [vmem:[%s493_s1] sm:$0xff]  ;;  %v23_v1 = vld [vmem:[%s493_s1 + $0x8] sm:$0xff]  ;;  %303 = vmatprep.subr.bf16.mxu0 %v368_v2  ;;  %v24_v4 = vld [vmem:[%s493_s1 + $0x10] sm:$0xff]  ;;  %313 = vmatprep.subr.bf16.mxu1 %v368_v2  ;;  %vm371_vm2 = vmmov 1   ;;  %vm35_vm4 = vcmask 343040   ;;  %vm207_vm5 = vcmask 64512  }
   0x2   :  { %v304_v3 = vpack.c.bf16 %v23_v1, %v22_v0  ;;  %v25_v5 = vld [vmem:[%s493_s1 + $0x18] sm:$0xff]  ;;  %265 = vmatprep.mubr.msk.f32.mxu0 %vm369_vm0, %v370_v6  ;;  %300 = vmatprep.mubr.msk.f32.mxu1 %vm369_vm0, %v370_v6  ;;  %v114_v8 = vld [vmem:[%s495_s3] sm:$0xff]  ;;  %v115_v9 = vld [vmem:[%s495_s3 + $0x8] sm:$0xff] }
   0x3   :  { %v307_v7 = vpack.c.bf16 %v25_v5, %v24_v4  ;;  %v116_v10 = vld [vmem:[%s495_s3 + $0x10] sm:$0xff]  ;;  %v26_v11 = vld [vmem:[%s493_s1 + $0x20] sm:$0xff]  ;;  %v27_v12 = vld [vmem:[%s493_s1 + $0x28] sm:$0x3]  ;;  %v314_v13 = vpack.c.bf16 %v115_v9, %v114_v8 }
   0x4   :  { %305 = vmatpush3.bf16.msra.mxu0 %v304_v3  ;;  %v117_v14 = vld [vmem:[%s495_s3 + $0x18] sm:$0xff]  ;;  %v310_v16 = vpack.c.bf16 %v27_v12, %v26_v11  ;;  %v118_v17 = vld [vmem:[%s495_s3 + $0x20] sm:$0xff]  ;;  %v119_v18 = vld [vmem:[%s495_s3 + $0x28] sm:$0xff] }
   0x5   :  { %306 = vmatprep.subr.bf16.mxu0 %v368_v2  ;;  %315 = vmatpush3.bf16.msra.mxu1 %v314_v13  ;;  %v317_v15 = vpack.c.bf16 %v117_v14, %v116_v10  ;;  %vm311_vm3 = vmpackc.low %vm39_vm1, %vm371_vm2  ;;  %v320_v19 = vpack.c.bf16 %v119_v18, %v118_v17  ;;  %v21_v20 = vld [vmem:[%s492_s0] sm:$0xff]  ;;  %v120_v21 = vld [vmem:[%s495_s3 + $0x30] sm:$0xff] }
   0x6   :  { %316 = vmatprep.subr.bf16.mxu1 %v368_v2  ;;  %v121_v22 = vld [vmem:[%s495_s3 + $0x38] sm:$0xff]  ;;  %v122_v24 = vld [vmem:[%s495_s3 + $0x40] sm:$0xff]  ;;  %v123_v25 = vld [vmem:[%s495_s3 + $0x48] sm:$0xff] }
   0x7   :  { %v323_v23 = vpack.c.bf16 %v121_v22, %v120_v21  ;;  %v326_v26 = vpack.c.bf16 %v123_v25, %v122_v24  ;;  %v124_v27 = vld [vmem:[%s495_s3 + $0x50] sm:$0xff]  ;;  %v125_v28 = vld [vmem:[%s495_s3 + $0x58] sm:$0xff]  ;;  %v126_v30 = vld [vmem:[%s495_s3 + $0x60] sm:$0xff] }
   0x8   :  { %308 = vmatpush3.bf16.msra.mxu0 %v307_v7  ;;  %v329_v29 = vpack.c.bf16 %v125_v28, %v124_v27  ;;  %v127_v31 = vld [vmem:[%s495_s3 + $0x68] sm:$0xff]  ;;  %v128_v33 = vld [vmem:[%s495_s3 + $0x70] sm:$0xff]  ;;  %v129_v34 = vld [vmem:[%s495_s3 + $0x78] sm:$0xff] }
   0x9   :  { %309 = vmatprep.subr.bf16.mxu0 %v368_v2  ;;  %318 = vmatpush3.bf16.msra.mxu1 %v317_v15  ;;  %v332_v32 = vpack.c.bf16 %v127_v31, %v126_v30  ;;  %v335_v35 = vpack.c.bf16 %v129_v34, %v128_v33  ;;  %v225_v36 = vld [vmem:[%s494_s2] ss:$0 sm:$0xff] }
   0xa   :  { %319 = vmatprep.subr.bf16.mxu1 %v368_v2  ;;  %v228_v41 = vld [vmem:[%s496_s4] ss:$0 sm:$0xff] }
   0xc   :  { %312 = vmatpush3.bf16.msk.msra.mxu0 %vm311_vm3, %v310_v16 }
   0xd   :  { %321 = vmatpush3.bf16.msra.mxu1 %v320_v19 }
   0xe   :  { %322 = vmatprep.subr.bf16.mxu1 %v368_v2 }
   0xf   :  { %266 = vmatmul.mubr.msk.f32.vlgmr.msra.gmra.mrb[0].mxu0 %vm35_vm4, %v21_v20 }
  0x11   :  { %324 = vmatpush3.bf16.msra.mxu1 %v323_v23 }
  0x12   :  { %325 = vmatprep.subr.bf16.mxu1 %v368_v2 }
  0x15   :  { %327 = vmatpush3.bf16.msra.mxu1 %v326_v26 }
  0x16   :  { %328 = vmatprep.subr.bf16.mxu1 %v368_v2 }
  0x19   :  { %330 = vmatpush3.bf16.msra.mxu1 %v329_v29 }
  0x1a   :  { %331 = vmatprep.subr.bf16.mxu1 %v368_v2 }
  0x1d   :  { %333 = vmatpush3.bf16.msra.mxu1 %v332_v32 }
  0x1e   :  { %334 = vmatprep.subr.bf16.mxu1 %v368_v2 }
  0x21   :  { %336 = vmatpush3.bf16.msra.mxu1 %v335_v35 }
  0xe2   :  { %v109_v37 = vpop.f32.mrb[0].mxu0 }
  0xe3   :  { %v110_v38 = vadd.f32 %v225_v36, %v109_v37  ;;  %v267_v39 = vpop.f32.mrb[1].mxu0 }
  0xe5   :  { %v113_v40 = vmax.f32 %v110_v38, 0.0 }
  0xe7   :  { %301 = vmatmul.mubr.f32.vlgmr.msra.gmra.mrb[0].mxu1 %v113_v40 }
 0x1ba   :  { %v203_v42 = vpop.f32.mrb[0].mxu1 }
 0x1bb   :  { %v204_v43 = vadd.f32 %v228_v41, %v203_v42  ;;  %v302_v44 = vpop.f32.mrb[1].mxu1 }
 0x1bd   :  { %208 = vst.msk [vmem:[#allocation2] sm:$0xff] %vm207_vm5, %v204_v43 }
 0x1be   :  { %213 = vsyncadd [#allocation3], 112  ;;  %s372_s3 = smov [#allocation2]  }
 0x1bf   :  { %s214_s16 = sshll.u32 %s372_s3, 4  ;;  %s215_s16 = int_to_ptr.vmem [resolvable:$true] %s214_s16 }
 0x1c0   :  { %s344_s1 = scalar_lea.vmem %s215_s16, 16  ;;  %s348_s2 = scalar_lea.vmem %s215_s16, 128 }
 0x1c1   :  { %p345_p0 = scmp.ne.s32.totalorder %s215_s16, %s344_s1  ;;  %p349_p1 = scmp.lt.s32.totalorder %s215_s16, %s215_s16 }
 0x1c2   :  { %p350_p2 = scmp.lt.s32.totalorder %s348_s2, %s344_s1 }
 0x1c4   :  { %p351_p3 = por %p350_p2, %p349_p1 }
 0x1c6   :  { %p352_p4 = pnand %p351_p3, %p345_p0 }
 0x1c8   :  { %355 = shalt.err (!%p352_p4)
}
 0x1c9   :  { %s356_s4 = scalar_lea.hbm %s497_s5, 16 }
 0x1ca   :  { %p357_p5 = scmp.ne.s32.totalorder %s497_s5, %s356_s4  ;;  %p360_p6 = scmp.lt.u32.totalorder %s356_s4, %s497_s5 }
 0x1cc   :  { %p362_p7 = pnand %p360_p6, %p357_p5 }
 0x1ce   :  { %365 = shalt.err (!%p362_p7)
}
 0x1cf   :  { %s373_s23 = smov 16   ;;  %s374_s24 = smov 1  }
 0x1d0   :  { %220 = dma.vmem_to_hbm [thread:$0]  %s215_s16, 16, %s497_s5, [#allocation3], %s373_s23, %s373_s23, %s374_s24  }
 0x1d1   :  { %366 = dma.done.wait [#allocation3], 128  }
 0x1d2   :  { %367 = vsyncadd [#allocation3], 4294967168 }
 0x1d3   :  { %224 = vsyncpa [#allocation3], 1 }

</bundles_post_ra>
